<compile_context>
chip_gen: v7x
topology: tpu7x:2x2x1
jax: 0.10.0
libtpu: 0.0.40
codegen_flags: <defaults>
</compile_context>

<pallas_src>
import functools

import jax
import jax.numpy as jnp
from jax.experimental import pallas as pl
from jax.experimental.pallas import tpu as pltpu


def _chan_pad_kernel(x_ref, o_ref, *, pad, c, j):
    """One grid step: channel zero-pad copy on a tile of flattened images.

    x_ref: (b_tile, C * J)      one lane-dense row per image (J = H_out*W_out)
    o_ref: (b_tile, C_out * J)  C_out = C + 2*pad
    Row layout: [pad*J zeros | C*J copied data | pad*J zeros]
    """
    b = o_ref.shape[0]
    dt = o_ref.dtype
    lo = pad * j
    hi = lo + c * j
    if pad > 0:
        o_ref[:, :lo] = jnp.zeros((b, lo), dt)
        o_ref[:, hi:] = jnp.zeros((b, o_ref.shape[1] - hi), dt)
    o_ref[:, lo:hi] = x_ref[...]


def _pick_batch_tile(n, bytes_per_image, target_bytes=8 << 20, min_steps=4):
    """Largest divisor of n with tile <= target, keeping >= min_steps grid steps
    (capped at n) so the pipeline stays deep and both v7x cores get work."""
    min_steps = min(min_steps, n)
    b_tile = 1
    for d in range(1, n + 1):
        if n % d:
            continue
        if n // d < min_steps:
            break
        if d * bytes_per_image <= target_bytes:
            b_tile = d
    return b_tile


def lambda_shortcut(x, planes, stride=2):
    """Pallas implementation of the ResNet option-A shortcut LambdaLayer.

    x: (N, C, H, W) float array (NCHW, like PyTorch).
    Returns: (N, C + 2*(planes//4), ceil(H/stride), ceil(W/stride)).
    """
    N, C, H, W = x.shape
    pad = planes // 4
    H_out = -(-H // stride)
    W_out = -(-W // stride)
    C_out = C + 2 * pad
    J = H_out * W_out

    # Hoist BOTH spatial strides into the wrapper (plain XLA strided slice):
    # the kernel then only performs the channel zero-pad (pure data movement).
    x_ds = x[:, :, ::stride, ::stride]                     # (N, C, H_out, W_out)

    itemsize = jnp.dtype(x.dtype).itemsize
    bytes_per_image = (C * J + C_out * J) * itemsize
    b_tile = _pick_batch_tile(N, bytes_per_image)
    G = N // b_tile

    # Lane-dense view: one flattened image per row.  The grid axis is the
    # leading (squeezed) dim, so the block's last two dims always equal the
    # full array dims regardless of b_tile / C / J (no (8,128) issues).
    x_rows = x_ds.reshape(G, b_tile, C * J)

    kern = functools.partial(_chan_pad_kernel, pad=pad, c=C, j=J)

    out_rows = pl.pallas_call(
        kern,
        out_shape=jax.ShapeDtypeStruct((G, b_tile, C_out * J), x.dtype),
        grid=(G,),
        in_specs=[pl.BlockSpec((None, b_tile, C * J), lambda g: (g, 0, 0))],
        out_specs=pl.BlockSpec((None, b_tile, C_out * J), lambda g: (g, 0, 0)),
        compiler_params=pltpu.CompilerParams(
            dimension_semantics=("parallel",),
            vmem_limit_bytes=32 * 1024 * 1024,
        ),
    )(x_rows)

    return out_rows.reshape(N, C_out, H_out, W_out)


if __name__ == "__main__":
    key = jax.random.PRNGKey(0)
    N, C, H, W = 2, 4, 16, 16
    planes = 8  # -> pad = planes//4 = 2 channels each side, C_out = 8

    x = jax.random.normal(key, (N, C, H, W), dtype=jnp.float32)

    out = lambda_shortcut(x, planes, stride=2)
    out = jax.block_until_ready(out)

    # Reference: exactly the PyTorch lambda's semantics in plain JAX.
    pad = planes // 4
    ref = jnp.pad(x[:, :, ::2, ::2], ((0, 0), (pad, pad), (0, 0), (0, 0)))

    assert out.shape == ref.shape, (out.shape, ref.shape)
    assert out.dtype == ref.dtype
    assert jnp.allclose(out, ref, atol=1e-5, rtol=1e-5), "mismatch vs reference"

    print("KERNEL_OK")
</pallas_src>

<mosaic_0001>
module attributes {stable_mosaic.version = 11 : i64} {
  func.func @_chan_pad_kernel(%arg0: i32, %arg1: memref<1x1x256xf32, #tpu.memory_space<vmem>>, %arg2: memref<1x1x512xf32, #tpu.memory_space<vmem>>) attributes {dimension_semantics = [#tpu.dimension_semantics<parallel>], iteration_bounds = array<i64: 2>, scalar_prefetch = 0 : i64, scratch_operands = 0 : i64, tpu.core_type = #tpu.core_type<tc>, window_params = [{transform_indices = @transform_0, window_bounds = array<i64: 1, 1, 256>}, {transform_indices = @transform_1, window_bounds = array<i64: 1, 1, 512>}]} {
    %cst = arith.constant 0.000000e+00 : f32
    %0 = vector.broadcast %cst : f32 to vector<1x128xf32>
    %c0 = arith.constant 0 : index
    %c0_0 = arith.constant 0 : index
    %c0_1 = arith.constant 0 : index
    %1 = vector.load %arg2[%c0, %c0_0, %c0_1] : memref<1x1x512xf32, #tpu.memory_space<vmem>>, vector<1x1x128xf32>
    %2 = vector.shape_cast %1 : vector<1x1x128xf32> to vector<1x128xf32>
    %3 = vector.shape_cast %0 : vector<1x128xf32> to vector<1x1x128xf32>
    tpu.vector_store %arg2[%c0, %c0_0, %c0_1], %3 {strides = array<i32>} : memref<1x1x512xf32, #tpu.memory_space<vmem>>, vector<1x1x128xf32>,
    %cst_2 = arith.constant 0.000000e+00 : f32
    %4 = vector.broadcast %cst_2 : f32 to vector<1x128xf32>
    %c0_3 = arith.constant 0 : index
    %c0_4 = arith.constant 0 : index
    %c384 = arith.constant 384 : index
    %5 = vector.load %arg2[%c0_3, %c0_4, %c384] : memref<1x1x512xf32, #tpu.memory_space<vmem>>, vector<1x1x128xf32>
    %6 = vector.shape_cast %5 : vector<1x1x128xf32> to vector<1x128xf32>
    %7 = vector.shape_cast %4 : vector<1x128xf32> to vector<1x1x128xf32>
    tpu.vector_store %arg2[%c0_3, %c0_4, %c384], %7 {strides = array<i32>} : memref<1x1x512xf32, #tpu.memory_space<vmem>>, vector<1x1x128xf32>,
    %c0_5 = arith.constant 0 : index
    %c0_6 = arith.constant 0 : index
    %c0_7 = arith.constant 0 : index
    %8 = vector.load %arg1[%c0_5, %c0_6, %c0_7] : memref<1x1x256xf32, #tpu.memory_space<vmem>>, vector<1x1x256xf32>
    %9 = vector.shape_cast %8 : vector<1x1x256xf32> to vector<1x256xf32>
    %c0_8 = arith.constant 0 : index
    %c0_9 = arith.constant 0 : index
    %c128 = arith.constant 128 : index
    %10 = vector.load %arg2[%c0_8, %c0_9, %c128] : memref<1x1x512xf32, #tpu.memory_space<vmem>>, vector<1x1x256xf32>
    %11 = vector.shape_cast %10 : vector<1x1x256xf32> to vector<1x256xf32>
    %12 = vector.shape_cast %9 : vector<1x256xf32> to vector<1x1x256xf32>
    tpu.vector_store %arg2[%c0_8, %c0_9, %c128], %12 {strides = array<i32>} : memref<1x1x512xf32, #tpu.memory_space<vmem>>, vector<1x1x256xf32>,
    return
  }
  func.func @transform_0(%arg0: i32) -> (i32, i32, i32) {
    %c0_i32 = arith.constant 0 : i32
    %c0_i32_0 = arith.constant 0 : i32
    %c0_i32_1 = arith.constant 0 : i32
    return %arg0, %c0_i32, %c0_i32_0 : i32, i32, i32
  }
  func.func @transform_1(%arg0: i32) -> (i32, i32, i32) {
    %c0_i32 = arith.constant 0 : i32
    %c0_i32_0 = arith.constant 0 : i32
    %c0_i32_1 = arith.constant 0 : i32
    return %arg0, %c0_i32, %c0_i32_0 : i32, i32, i32
  }
}

</mosaic_0001>

<bundles_post_ra>
// kernel: tpu_custom_call.1
= control target key start
LH: loop header
LB: loop body
LE: loop exit
PB: predicated region body
PF: predicated region fallthrough
CT: control target
= control target key end

     0   :  { %6 = vsyncpa [#allocation3], 0  ;;  %s564_s0 = inlined_call_operand.hbm [shape: f32[2,1,256], index: 0, kind: input, shape index: {}]   ;;  %s565_s1 = inlined_call_operand.hbm [shape: f32[2,1,512], index: 1, kind: output, shape index: {}]  }
   0x1   :  { %8 = vsyncpa [#allocation3 + $0x1], 0 }
   0x2   :  { %9 = vsyncpa [#allocation4], 0 }
   0x3   :  { %11 = vsyncpa [#allocation4 + $0x1], 0  ;;  %s402_s6 = smov 0   ;;  %s404_s7 = smov 0  }
   0x4   :  { %s406_s8 = smov 0   ;;  %s408_s9 = smov 0  }
   0x5 LB: > { %s423_s10 = sadd.s32 4294967295, %s387_s9   ;;  %s228_s11 = sadd.s32 4294967294, %s387_s9   ;;  %s387_s9 = sphi %s408_s9, %s580_s9   ;;  %s383_s8 = sphi %s406_s8, %s579_s8   ;;  %s379_s7 = sphi %s404_s7, %s578_s7   ;;  %s375_s6 = sphi %s402_s6, %s577_s6  }
   0x6   : > { %s427_s12 = sadd.s32 1, %s387_s9   ;;  %s24_s13 = sadd.s32 1, %s383_s8 }
   0x7   : > { %s21_s14 = ssub.s32 %s387_s9, %s427_s12  ;;  %p31_p0 = scmp.ne.s32.totalorder %s383_s8, %s379_s7 }
   0x8   : > { %p22_p1 = scmp.eq.s32.totalorder %s21_s14, 0  ;;  %p32_p2 = scmp.eq.s32.totalorder %s387_s9, 0 }
   0x9   : > { %p37_p3 = scmp.ne.s32.totalorder %s379_s7, %s375_s6  ;;  %p38_p4 = scmp.eq.s32.totalorder %s423_s10, 0 }
   0xa   : > { %s439_s15 = scalar_select %p22_p1, %s383_s8, %s24_s13  }
   0xb   : > { %p441_p5 = por %p32_p2, %p31_p0  ;;  %p445_p6 = por %p38_p4, %p37_p3 }
   0xc   : > { %p61_p7 = scmp.eq.s32.totalorder %s423_s10, 1  ;;  %p67_p8 = scmp.eq.s32.totalorder %s228_s11, 1 }
   0xd   : > { %p256_p10 = scmp.lt.s32.totalorder %s387_s9, 2  ;;  %s87_s20 = sand.u32 1, %s383_s8  }
   0xe   : > { %p452_p11 = por %p61_p7, %p31_p0  ;;  %p456_p12 = por %p67_p8, %p37_p3 }
   0xf   : > { %s242_s21 = sshll.u32 %s387_s9, 5  ;;  %s231_s22 = sshll.u32 %s87_s20, 1 }
  0x10   : > { %s569_s18 = scalar_select %p452_p11, 1, 0 }
  0x11   : > { %s570_s19 = scalar_select %p456_p12, 1, 0 }
  0x12   : > { %s465_s25 = scalar_lea.hbm %s564_s0, %s242_s21  ;;  %s91_s26 = scalar_lea.vmem [#allocation2], %s231_s22 }
  0x13   : > { %s99_s27 = sshll.u32 %s91_s26, 4  ;;  %p469_p13 = pnand %p256_p10, %p441_p5  ;;  %s473_s27 = int_to_ptr.vmem [resolvable:$true] %s99_s27 }
  0x14   : > { %s88_s29 = scalar_lea.sflag [#allocation3], %s87_s20  ;;  %s291_s30 = scalar_lea.hbm %s465_s25, 32 }
  0x15   : > { %p292_p2 = scmp.ne.s32.totalorder %s465_s25, %s291_s30  ;;  %p293_p3 = pneg %p469_p13 }
  0x16   : > { %s296_s4 = scalar_lea.hbm %s564_s0, 64  ;;  %p297_p5 = scmp.lt.u32.totalorder %s465_s25, %s564_s0 }
  0x17   : > { %p294_p4 = pnand %p293_p3, %p292_p2  ;;  %p298_p8 = scmp.lt.u32.totalorder %s296_s4, %s291_s30 }
  0x18   : > { %p300_p9 = scmp.lt.u32.totalorder %s291_s30, %s465_s25 }
  0x19   : > { %p295_p7 = pneg %p294_p4  ;;  %p299_p10 = por %p298_p8, %p297_p5 }
  0x1b   : > { %p301_p0 = por %p300_p9, %p299_p10 }
  0x1d   : > { %p302_p1 = pnand %p301_p0, %p295_p7 }
  0x1f   : > { %305 = shalt.err (!%p302_p1)
}
  0x20   : > { %s306_s13 = scalar_lea.vmem %s473_s27, 32  ;;  %s389_s14 = smov [#allocation2]  }
  0x21   : > { %p307_p2 = scmp.ne.s32.totalorder %s473_s27, %s306_s13  ;;  %s311_s16 = sshll.u32 %s389_s14, 4  ;;  %s312_s16 = int_to_ptr.vmem [resolvable:$false] %s311_s16 }
  0x22   : > { %s313_s20 = scalar_lea.vmem %s312_s16, 64  ;;  %p314_p11 = scmp.lt.s32.totalorder %s473_s27, %s312_s16 }
  0x23   : > { %p309_p4 = pnand %p307_p2, %p293_p3  ;;  %p315_p5 = scmp.lt.s32.totalorder %s313_s20, %s306_s13 }
  0x25   : > { %p310_p12 = pneg %p309_p4  ;;  %p316_p8 = por %p315_p5, %p314_p11 }
  0x27   : > { %p317_p9 = pnand %p316_p8, %p310_p12 }
  0x29   : > { %320 = shalt.err (!%p317_p9)
}
  0x2a   : > { %251 = dma.hbm_to_vmem [thread:$0]  (!%p469_p13), %s465_s25, 32, %s473_s27, %s88_s29  }
  0x2b   : > { %p572_p0 = scmp.lt.s32.totalorder %s387_s9, 3  ;;  %p573_p1 = scmp.ge.s32.totalorder %s387_s9, 1 }
  0x2d   : > { %p105_p3 = pnand %p573_p1, %p572_p0 }
  0x2e   : > { %s507_s21 = sand.u32 (!%p105_p3), 1, %s379_s7  }
  0x2f   : > { %108 = sbr.rel (%p105_p3) target bundleno = 81 (0x51), region = 24  ;;  %s235_s22 = sshll.u32 (!%p105_p3), %s507_s21, 1 }
  0x30   : > { %s111_s23 = scalar_lea.sflag (!%p105_p3), [#allocation3], %s507_s21  ;;  %s114_s24 = scalar_lea.vmem (!%p105_p3), [#allocation2], %s235_s22 }
  0x36   : > { %366 = dma.done.wait (%p445_p6), %s111_s23, 32  }
  0x37   : > { %368 = vsyncadd (%p445_p6), %s111_s23, 4294967264  ;;  %s236_s25 = sshll.u32 %s507_s21, 2  ;;  %v133_v0 = vlaneseq  ;;  %v390_v1 = vmov 0.0   ;;  %s243_s28 = sshll.u32 %s423_s10, 6  ;;  %v139_v2 = vld [vmem:[%s114_s24] sm:$0x3] }
  0x38   : > { %s132_s26 = scalar_lea.vmem [#allocation5], %s236_s25  ;;  %s522_s17 = scalar_lea.hbm %s565_s1, %s243_s28 }
  0x39   : > { %vm135_vm0 = vcmp.lt.s32.totalorder %v133_v0, 128  ;;  %s158_s27 = sshll.u32 %s132_s26, 4  ;;  %vm140_vm1 = vcmp.lt.s32.totalorder %v133_v0, 256  ;;  %s144_s2 = scalar_lea.sflag [#allocation4], %s507_s21  ;;  %s517_s27 = int_to_ptr.vmem [resolvable:$true] %s158_s27 }
  0x3a   : > { %137 = vst.msk [vmem:[%s132_s26] sm:$0x1] %vm135_vm0, %v390_v1  ;;  %138 = vst.msk [vmem:[%s132_s26 + $0x3] sm:$0x1] %vm135_vm0, %v390_v1  ;;  %s321_s3 = scalar_lea.vmem %s517_s27, 64  ;;  %p574_p11 = scmp.ne.s32.totalorder %s569_s18, 0 }
  0x3b   : > { %142 = vst.msk [vmem:[%s132_s26 + $0x1] sm:$0x3] %vm140_vm1, %v139_v2  ;;  %p322_p6 = scmp.ne.s32.totalorder %s517_s27, %s321_s3  ;;  %s391_s10 = smov [#allocation5]  }
  0x3c   : > { %s325_s4 = sshll.u32 %s391_s10, 4  ;;  %s326_s4 = int_to_ptr.vmem [resolvable:$false] %s325_s4 }
  0x3d   : > { %p323_p12 = pnand %p322_p6, %p574_p11  ;;  %s327_s5 = scalar_lea.vmem %s326_s4, 128 }
  0x3e   : > { %p328_p7 = scmp.lt.s32.totalorder %s517_s27, %s326_s4  ;;  %p329_p10 = scmp.lt.s32.totalorder %s327_s5, %s321_s3 }
  0x3f   : > { %p324_p13 = pneg %p323_p12 }
  0x40   : > { %p330_p2 = por %p329_p10, %p328_p7 }
  0x42   : > { %p331_p4 = pnand %p330_p2, %p324_p13 }
  0x44   : > { %334 = shalt.err (!%p331_p4)
}
  0x45   : > { %s335_s11 = scalar_lea.hbm %s522_s17, 64  ;;  %s339_s16 = scalar_lea.hbm %s565_s1, 128 }
  0x46   : > { %p336_p5 = scmp.ne.s32.totalorder %s522_s17, %s335_s11  ;;  %p340_p0 = scmp.lt.u32.totalorder %s522_s17, %s565_s1 }
  0x47   : > { %p341_p1 = scmp.lt.u32.totalorder %s339_s16, %s335_s11  ;;  %p343_p6 = scmp.lt.u32.totalorder %s335_s11, %s522_s17 }
  0x48   : > { %p337_p8 = pnand %p336_p5, %p574_p11 }
  0x49   : > { %p342_p3 = por %p341_p1, %p340_p0 }
  0x4a   : > { %p338_p9 = pneg %p337_p8 }
  0x4b   : > { %p344_p12 = por %p343_p6, %p342_p3 }
  0x4d   : > { %p345_p13 = pnand %p344_p12, %p338_p9 }
  0x4f   : > { %348 = shalt.err (!%p345_p13)
}
  0x50   : > { %246 = dma.vmem_to_hbm [thread:$0]  (%p574_p11), %s517_s27, 64, %s522_s17, %s144_s2  }
  0x51 PF: > { %s170_s22 = sand.u32 1, %s375_s6   ;;  %p575_p7 = scmp.ne.s32.totalorder %s570_s19, 0 }
  0x52   : > { %p576_p10 = scmp.ge.s32.totalorder %s387_s9, 2  ;;  %s171_s23 = scalar_lea.sflag [#allocation4], %s170_s22 }
  0x54   : > { %p253_p2 = pnand %p576_p10, %p575_p7 }
  0x56   : > { %370 = dma.done.wait (!%p253_p2), %s171_s23, 64  }
  0x57   : > { %372 = vsyncadd (!%p253_p2), %s171_s23, 4294967232  ;;  %p14_p4 = scmp.ge.s32.totalorder %s427_s12, 4   ;;  %s577_s6 = smov %s379_s7 }
  0x58   : > { %s578_s7 = smov %s383_s8  ;;  %s579_s8 = smov %s439_s15 }
  0x59   : > { %s580_s9 = smov %s427_s12  ;;  %16 = sbr.rel (!%p14_p4) target bundleno = 5 (0x5), region = 69 }
  0x60   :  { %176 = vsyncpa [#allocation3], 1 }
  0x61   :  { %178 = vsyncpa [#allocation3 + $0x1], 1 }
  0x62   :  { %179 = vsyncpa [#allocation4], 1 }
  0x63   :  { %181 = vsyncpa [#allocation4 + $0x1], 1 }

</bundles_post_ra>
